<compile_context>
chip_gen: v7x
topology: tpu7x:2x2x1
jax: 0.10.0
libtpu: 0.0.40
codegen_flags: <defaults>
</compile_context>

<pallas_src>
import functools

import jax
import jax.numpy as jnp
from jax.experimental import pallas as pl
from jax.experimental.pallas import tpu as pltpu


def _dspa_cell_kernel(x_ref, state_ref, emb_ref, bg_ref, bu_ref,
                      sup_ref, wx_ref, wgs_ref, wus_ref, h_ref):
    # Shapes (M = batch_block * N):
    #   x_ref   (M, Din)          state_ref (M, Dh)
    #   emb_ref (M, E)            bg_ref (M, 2*Dh)    bu_ref (M, Dh)
    #   sup_ref (K, M, M)         block-diagonal over the batch block; k == 0 is
    #                             the identity and is never read
    #   wx_ref  (K, Din, E*3*Dh)  gate x-part || update x-part on the out dim
    #   wgs_ref (K, Dh, E*2*Dh)   wus_ref (K, Dh, E*Dh)
    #   h_ref   (M, Dh)
    K = sup_ref.shape[0]
    E = emb_ref.shape[1]
    Dh = h_ref.shape[1]
    cdt = wx_ref.dtype                               # matmul operand dtype

    x = x_ref[...].astype(cdt)                       # (M, Din)
    state_f = state_ref[...].astype(jnp.float32)     # (M, Dh)
    state_c = state_f.astype(cdt)
    emb = emb_ref[...].astype(jnp.float32)           # (M, E)

    def aggregate(v):
        # Chebyshev aggregation; T0 = I so the k == 0 term is `v` itself.
        outs = [v]
        for k in range(1, K):
            g = jnp.dot(sup_ref[k], v, preferred_element_type=jnp.float32)
            outs.append(g.astype(cdt))
        return outs

    def weight_apply(gs, w_ref):
        # sum_k gs[k] @ w_ref[k] : (M, C) @ (C, E*Cout), f32 accumulation.
        y = jnp.dot(gs[0], w_ref[0], preferred_element_type=jnp.float32)
        for k in range(1, K):
            y = y + jnp.dot(gs[k], w_ref[k], preferred_element_type=jnp.float32)
        return y

    def emb_contract(y, cout):
        # out[:, o] = sum_e emb[:, e] * y[:, e*cout + o]   (E VPU FMAs)
        out = emb[:, 0:1] * y[:, 0:cout]
        for e in range(1, E):
            out = out + emb[:, e:e + 1] * y[:, e * cout:(e + 1) * cout]
        return out

    # x-dependent graph conv, computed once and shared by gate and update.
    yx = weight_apply(aggregate(x), wx_ref)          # (M, E*3*Dh)

    # Gate: z_r = sigmoid(gconv([x, state]))
    yg = yx[:, :E * 2 * Dh] + weight_apply(aggregate(state_c), wgs_ref)
    z_r = jax.nn.sigmoid(emb_contract(yg, 2 * Dh) + bg_ref[...])
    z = z_r[:, :Dh]
    r = z_r[:, Dh:]

    # Candidate: hc = tanh(gconv([x, z*state]))
    zs = (z * state_f).astype(cdt)
    yu = yx[:, E * 2 * Dh:] + weight_apply(aggregate(zs), wus_ref)
    hc = jnp.tanh(emb_contract(yu, Dh) + bu_ref[...])

    h = r * state_f + (1.0 - r) * hc
    h_ref[...] = h.astype(h_ref.dtype)


def dspa_cell(x, state, node_embeddings, learned_tilde, params, cheb_k,
              batch_block=1, param_dtype=jnp.bfloat16):
    """x: (B, N, Din), state: (B, N, Dh), node_embeddings: (N, E),
    learned_tilde: (N, N).  params: gate_w (E,K,Cin,2Dh), gate_b (E,2Dh),
    update_w (E,K,Cin,Dh), update_b (E,Dh).  Returns h: (B, N, Dh)."""
    B, N, Din = x.shape
    Dh = state.shape[-1]
    K = cheb_k
    bb = batch_block
    assert B % bb == 0, "batch_block must divide the batch size"
    M = bb * N
    hi = jax.lax.Precision.HIGHEST

    emb = node_embeddings.astype(jnp.float32)
    lt = learned_tilde.astype(jnp.float32)

    # Chebyshev supports of the learned Laplacian (batch-invariant glue).
    # Replicated block-diagonally when several batches are folded into M.
    sup = [jnp.eye(N, dtype=jnp.float32), lt]
    for _ in range(2, K):
        sup.append(2.0 * lt @ sup[-1] - sup[-2])
    supports = jnp.stack(sup[:K], axis=0)                            # (K, N, N)
    if bb > 1:
        supports = jnp.einsum('ab,knm->kanbm', jnp.eye(bb, dtype=jnp.float32),
                              supports).reshape(K, M, M)
    supports = supports.astype(param_dtype)

    # Repack weight pools: (E, K, Ci, Co) -> (K, Ci, E*Co); split along Cin
    # into the x part (first Din rows) and the state part (last Dh rows); fuse
    # the gate/update x parts along the output dim so sup_k @ x is reused.
    def to_kio(w):
        e_, k_, ci, co = w.shape
        return jnp.transpose(w, (1, 2, 0, 3)).reshape(k_, ci, e_ * co)

    gw = params["gate_w"].astype(jnp.float32)                        # (E,K,Cin,2Dh)
    uw = params["update_w"].astype(jnp.float32)                      # (E,K,Cin,Dh)
    wx = jnp.concatenate([to_kio(gw[:, :, :Din, :]),
                          to_kio(uw[:, :, :Din, :])], axis=-1)       # (K,Din,E*3Dh)
    wgs = to_kio(gw[:, :, Din:, :])                                  # (K,Dh,E*2Dh)
    wus = to_kio(uw[:, :, Din:, :])                                  # (K,Dh,E*Dh)
    wx, wgs, wus = (w.astype(param_dtype) for w in (wx, wgs, wus))

    # Batch-invariant pieces hoisted out of the kernel.
    bias_g = jnp.tile(jnp.dot(emb, params["gate_b"].astype(jnp.float32),
                              precision=hi), (bb, 1))                # (M, 2Dh)
    bias_u = jnp.tile(jnp.dot(emb, params["update_b"].astype(jnp.float32),
                              precision=hi), (bb, 1))                # (M, Dh)
    emb_rep = jnp.tile(emb, (bb, 1))                                 # (M, E)

    x2 = x.reshape(B * N, Din)
    state2 = state.reshape(B * N, Dh)

    def full_spec(a):
        n = a.ndim
        return pl.BlockSpec(a.shape, lambda g: (0,) * n)

    h2 = pl.pallas_call(
        _dspa_cell_kernel,
        out_shape=jax.ShapeDtypeStruct((B * N, Dh), x.dtype),
        grid=(B // bb,),
        in_specs=[
            pl.BlockSpec((M, Din), lambda g: (g, 0)),
            pl.BlockSpec((M, Dh), lambda g: (g, 0)),
            full_spec(emb_rep), full_spec(bias_g), full_spec(bias_u),
            full_spec(supports), full_spec(wx), full_spec(wgs), full_spec(wus),
        ],
        out_specs=pl.BlockSpec((M, Dh), lambda g: (g, 0)),
        compiler_params=pltpu.CompilerParams(
            dimension_semantics=("parallel",)),
    )(x2, state2, emb_rep, bias_g, bias_u, supports, wx, wgs, wus)
    return h2.reshape(B, N, Dh)


# ----------------------------- pure-JAX reference -----------------------------
def _q(a):
    # Mirror the kernel's bf16 operand rounding (accumulation stays in f32).
    return a.astype(jnp.bfloat16).astype(jnp.float32)


def _avwgcn_ref(x_in, emb, supports, wpool, bpool):
    hi = jax.lax.Precision.HIGHEST
    x_g = jnp.einsum('knm,bmc->bknc', _q(supports), _q(x_in), precision=hi)
    x_g = _q(jnp.transpose(x_g, (0, 2, 1, 3)))                      # (B,N,K,C)
    weights = jnp.einsum('nd,dkio->nkio', emb, _q(wpool), precision=hi)
    bias = jnp.dot(emb, bpool, precision=hi)
    return jnp.einsum('bnki,nkio->bno', x_g, weights, precision=hi) + bias


def _dspa_ref(x, state, emb, learned_tilde, params, cheb_k):
    N = emb.shape[0]
    Dh = state.shape[-1]
    lt = learned_tilde.astype(jnp.float32)
    sup = [jnp.eye(N, dtype=jnp.float32), lt]
    for _ in range(2, cheb_k):
        sup.append(2.0 * lt @ sup[-1] - sup[-2])
    supports = jnp.stack(sup[:cheb_k], axis=0)
    inp = jnp.concatenate([x, state], axis=-1)
    z_r = jax.nn.sigmoid(_avwgcn_ref(inp, emb, supports,
                                     params["gate_w"], params["gate_b"]))
    z, r = z_r[..., :Dh], z_r[..., Dh:]
    cand = jnp.concatenate([x, z * state], axis=-1)
    hc = jnp.tanh(_avwgcn_ref(cand, emb, supports,
                              params["update_w"], params["update_b"]))
    return r * state + (1.0 - r) * hc


if __name__ == "__main__":
    B, N, Din, Dh, E, K = 2, 16, 4, 32, 8, 3
    Cin = Din + Dh

    key = jax.random.PRNGKey(0)
    ks = jax.random.split(key, 8)
    x = jax.random.normal(ks[0], (B, N, Din), jnp.float32)
    state = jax.random.normal(ks[1], (B, N, Dh), jnp.float32)
    node_embeddings = jax.random.normal(ks[2], (N, E), jnp.float32)
    learned_tilde = 0.1 * jax.random.normal(ks[3], (N, N), jnp.float32)

    params = {
        "gate_w": 0.1 * jax.random.normal(ks[4], (E, K, Cin, 2 * Dh), jnp.float32),
        "gate_b": 0.1 * jax.random.normal(ks[5], (E, 2 * Dh), jnp.float32),
        "update_w": 0.1 * jax.random.normal(ks[6], (E, K, Cin, Dh), jnp.float32),
        "update_b": 0.1 * jax.random.normal(ks[7], (E, Dh), jnp.float32),
    }

    h_ref = _dspa_ref(x, state, node_embeddings, learned_tilde, params, K)

    # One batch per grid step (2 parallel steps -> both v7x TensorCores).
    run = jax.jit(functools.partial(dspa_cell, cheb_k=K, batch_block=1))
    h = jax.block_until_ready(run(x, state, node_embeddings, learned_tilde, params))
    assert h.shape == (B, N, Dh)
    err = float(jnp.max(jnp.abs(h - h_ref)))
    assert err < 1e-2, err

    # Batch fully folded into the matmul M dimension (block-diagonal supports).
    run2 = jax.jit(functools.partial(dspa_cell, cheb_k=K, batch_block=B))
    h2 = jax.block_until_ready(run2(x, state, node_embeddings, learned_tilde, params))
    err2 = float(jnp.max(jnp.abs(h2 - h_ref)))
    assert err2 < 1e-2, err2

    print("KERNEL_OK")
</pallas_src>

<mosaic_0001>
module attributes {stable_mosaic.version = 11 : i64} {
  func.func @_dspa_cell_kernel(%arg0: i32, %arg1: memref<16x4xf32, #tpu.memory_space<vmem>>, %arg2: memref<16x32xf32, #tpu.memory_space<vmem>>, %arg3: memref<16x8xf32, #tpu.memory_space<vmem>>, %arg4: memref<16x64xf32, #tpu.memory_space<vmem>>, %arg5: memref<16x32xf32, #tpu.memory_space<vmem>>, %arg6: memref<3x16x16xbf16, #tpu.memory_space<vmem>>, %arg7: memref<3x4x768xbf16, #tpu.memory_space<vmem>>, %arg8: memref<3x32x512xbf16, #tpu.memory_space<vmem>>, %arg9: memref<3x32x256xbf16, #tpu.memory_space<vmem>>, %arg10: memref<16x32xf32, #tpu.memory_space<vmem>>) attributes {dimension_semantics = [#tpu.dimension_semantics<parallel>], iteration_bounds = array<i64: 2>, scalar_prefetch = 0 : i64, scratch_operands = 0 : i64, tpu.core_type = #tpu.core_type<tc>, window_params = [{transform_indices = @transform_0, window_bounds = array<i64: 16, 4>}, {transform_indices = @transform_1, window_bounds = array<i64: 16, 32>}, {pipeline_mode = #tpu.pipeline_mode<synchronous>, transform_indices = @transform_2, window_bounds = array<i64: 16, 8>}, {pipeline_mode = #tpu.pipeline_mode<synchronous>, transform_indices = @transform_3, window_bounds = array<i64: 16, 64>}, {pipeline_mode = #tpu.pipeline_mode<synchronous>, transform_indices = @transform_4, window_bounds = array<i64: 16, 32>}, {pipeline_mode = #tpu.pipeline_mode<synchronous>, transform_indices = @transform_5, window_bounds = array<i64: 3, 16, 16>}, {pipeline_mode = #tpu.pipeline_mode<synchronous>, transform_indices = @transform_6, window_bounds = array<i64: 3, 4, 768>}, {pipeline_mode = #tpu.pipeline_mode<synchronous>, transform_indices = @transform_7, window_bounds = array<i64: 3, 32, 512>}, {pipeline_mode = #tpu.pipeline_mode<synchronous>, transform_indices = @transform_8, window_bounds = array<i64: 3, 32, 256>}, {transform_indices = @transform_9, window_bounds = array<i64: 16, 32>}]} {
    %c0 = arith.constant 0 : index
    %c0_0 = arith.constant 0 : index
    %0 = vector.load %arg1[%c0, %c0_0] : memref<16x4xf32, #tpu.memory_space<vmem>>, vector<16x4xf32>
    %1 = arith.truncf %0 : vector<16x4xf32> to vector<16x4xbf16>
    %c0_1 = arith.constant 0 : index
    %c0_2 = arith.constant 0 : index
    %2 = vector.load %arg2[%c0_1, %c0_2] : memref<16x32xf32, #tpu.memory_space<vmem>>, vector<16x32xf32>
    %3 = arith.truncf %2 : vector<16x32xf32> to vector<16x32xbf16>
    %c0_3 = arith.constant 0 : index
    %c0_4 = arith.constant 0 : index
    %4 = vector.load %arg3[%c0_3, %c0_4] : memref<16x8xf32, #tpu.memory_space<vmem>>, vector<16x8xf32>
    %c1 = arith.constant 1 : index
    %c0_5 = arith.constant 0 : index
    %c0_6 = arith.constant 0 : index
    %5 = vector.load %arg6[%c1, %c0_5, %c0_6] : memref<3x16x16xbf16, #tpu.memory_space<vmem>>, vector<1x16x16xbf16>
    %6 = vector.shape_cast %5 : vector<1x16x16xbf16> to vector<16x16xbf16>
    %cst = arith.constant dense<0.000000e+00> : vector<16x4xf32>
    %7 = tpu.matmul %6, %1, %cst {dimension_numbers = #tpu.dot_dimension_numbers<[1], [0], [0], [1], [0, 0, 1, 1], [], []>} : vector<16x16xbf16>, vector<16x4xbf16>, vector<16x4xf32> -> vector<16x4xf32>
    %8 = arith.truncf %7 : vector<16x4xf32> to vector<16x4xbf16>
    %c2 = arith.constant 2 : index
    %c0_7 = arith.constant 0 : index
    %c0_8 = arith.constant 0 : index
    %9 = vector.load %arg6[%c2, %c0_7, %c0_8] : memref<3x16x16xbf16, #tpu.memory_space<vmem>>, vector<1x16x16xbf16>
    %10 = vector.shape_cast %9 : vector<1x16x16xbf16> to vector<16x16xbf16>
    %cst_9 = arith.constant dense<0.000000e+00> : vector<16x4xf32>
    %11 = tpu.matmul %10, %1, %cst_9 {dimension_numbers = #tpu.dot_dimension_numbers<[1], [0], [0], [1], [0, 0, 1, 1], [], []>} : vector<16x16xbf16>, vector<16x4xbf16>, vector<16x4xf32> -> vector<16x4xf32>
    %12 = arith.truncf %11 : vector<16x4xf32> to vector<16x4xbf16>
    %c0_10 = arith.constant 0 : index
    %c0_11 = arith.constant 0 : index
    %c0_12 = arith.constant 0 : index
    %13 = vector.load %arg7[%c0_10, %c0_11, %c0_12] : memref<3x4x768xbf16, #tpu.memory_space<vmem>>, vector<1x4x768xbf16>
    %14 = vector.shape_cast %13 : vector<1x4x768xbf16> to vector<4x768xbf16>
    %cst_13 = arith.constant dense<0.000000e+00> : vector<16x768xf32>
    %15 = tpu.matmul %1, %14, %cst_13 {dimension_numbers = #tpu.dot_dimension_numbers<[1], [0], [0], [1], [0, 0, 1, 1], [], []>} : vector<16x4xbf16>, vector<4x768xbf16>, vector<16x768xf32> -> vector<16x768xf32>
    %c1_14 = arith.constant 1 : index
    %c0_15 = arith.constant 0 : index
    %c0_16 = arith.constant 0 : index
    %16 = vector.load %arg7[%c1_14, %c0_15, %c0_16] : memref<3x4x768xbf16, #tpu.memory_space<vmem>>, vector<1x4x768xbf16>
    %17 = vector.shape_cast %16 : vector<1x4x768xbf16> to vector<4x768xbf16>
    %cst_17 = arith.constant dense<0.000000e+00> : vector<16x768xf32>
    %18 = tpu.matmul %8, %17, %cst_17 {dimension_numbers = #tpu.dot_dimension_numbers<[1], [0], [0], [1], [0, 0, 1, 1], [], []>} : vector<16x4xbf16>, vector<4x768xbf16>, vector<16x768xf32> -> vector<16x768xf32>
    %19 = arith.addf %15, %18 : vector<16x768xf32>
    %c2_18 = arith.constant 2 : index
    %c0_19 = arith.constant 0 : index
    %c0_20 = arith.constant 0 : index
    %20 = vector.load %arg7[%c2_18, %c0_19, %c0_20] : memref<3x4x768xbf16, #tpu.memory_space<vmem>>, vector<1x4x768xbf16>
    %21 = vector.shape_cast %20 : vector<1x4x768xbf16> to vector<4x768xbf16>
    %cst_21 = arith.constant dense<0.000000e+00> : vector<16x768xf32>
    %22 = tpu.matmul %12, %21, %cst_21 {dimension_numbers = #tpu.dot_dimension_numbers<[1], [0], [0], [1], [0, 0, 1, 1], [], []>} : vector<16x4xbf16>, vector<4x768xbf16>, vector<16x768xf32> -> vector<16x768xf32>
    %23 = arith.addf %19, %22 : vector<16x768xf32>
    %24 = vector.extract_strided_slice %23 {offsets = [0, 0], sizes = [16, 512], strides = [1, 1]} : vector<16x768xf32> to vector<16x512xf32>
    %c1_22 = arith.constant 1 : index
    %c0_23 = arith.constant 0 : index
    %c0_24 = arith.constant 0 : index
    %25 = vector.load %arg6[%c1_22, %c0_23, %c0_24] : memref<3x16x16xbf16, #tpu.memory_space<vmem>>, vector<1x16x16xbf16>
    %26 = vector.shape_cast %25 : vector<1x16x16xbf16> to vector<16x16xbf16>
    %cst_25 = arith.constant dense<0.000000e+00> : vector<16x32xf32>
    %27 = tpu.matmul %26, %3, %cst_25 {dimension_numbers = #tpu.dot_dimension_numbers<[1], [0], [0], [1], [0, 0, 1, 1], [], []>} : vector<16x16xbf16>, vector<16x32xbf16>, vector<16x32xf32> -> vector<16x32xf32>
    %28 = arith.truncf %27 : vector<16x32xf32> to vector<16x32xbf16>
    %c2_26 = arith.constant 2 : index
    %c0_27 = arith.constant 0 : index
    %c0_28 = arith.constant 0 : index
    %29 = vector.load %arg6[%c2_26, %c0_27, %c0_28] : memref<3x16x16xbf16, #tpu.memory_space<vmem>>, vector<1x16x16xbf16>
    %30 = vector.shape_cast %29 : vector<1x16x16xbf16> to vector<16x16xbf16>
    %cst_29 = arith.constant dense<0.000000e+00> : vector<16x32xf32>
    %31 = tpu.matmul %30, %3, %cst_29 {dimension_numbers = #tpu.dot_dimension_numbers<[1], [0], [0], [1], [0, 0, 1, 1], [], []>} : vector<16x16xbf16>, vector<16x32xbf16>, vector<16x32xf32> -> vector<16x32xf32>
    %32 = arith.truncf %31 : vector<16x32xf32> to vector<16x32xbf16>
    %c0_30 = arith.constant 0 : index
    %c0_31 = arith.constant 0 : index
    %c0_32 = arith.constant 0 : index
    %33 = vector.load %arg8[%c0_30, %c0_31, %c0_32] : memref<3x32x512xbf16, #tpu.memory_space<vmem>>, vector<1x32x512xbf16>
    %34 = vector.shape_cast %33 : vector<1x32x512xbf16> to vector<32x512xbf16>
    %cst_33 = arith.constant dense<0.000000e+00> : vector<16x512xf32>
    %35 = tpu.matmul %3, %34, %cst_33 {dimension_numbers = #tpu.dot_dimension_numbers<[1], [0], [0], [1], [0, 0, 1, 1], [], []>} : vector<16x32xbf16>, vector<32x512xbf16>, vector<16x512xf32> -> vector<16x512xf32>
    %c1_34 = arith.constant 1 : index
    %c0_35 = arith.constant 0 : index
    %c0_36 = arith.constant 0 : index
    %36 = vector.load %arg8[%c1_34, %c0_35, %c0_36] : memref<3x32x512xbf16, #tpu.memory_space<vmem>>, vector<1x32x512xbf16>
    %37 = vector.shape_cast %36 : vector<1x32x512xbf16> to vector<32x512xbf16>
    %cst_37 = arith.constant dense<0.000000e+00> : vector<16x512xf32>
    %38 = tpu.matmul %28, %37, %cst_37 {dimension_numbers = #tpu.dot_dimension_numbers<[1], [0], [0], [1], [0, 0, 1, 1], [], []>} : vector<16x32xbf16>, vector<32x512xbf16>, vector<16x512xf32> -> vector<16x512xf32>
    %39 = arith.addf %35, %38 : vector<16x512xf32>
    %c2_38 = arith.constant 2 : index
    %c0_39 = arith.constant 0 : index
    %c0_40 = arith.constant 0 : index
    %40 = vector.load %arg8[%c2_38, %c0_39, %c0_40] : memref<3x32x512xbf16, #tpu.memory_space<vmem>>, vector<1x32x512xbf16>
    %41 = vector.shape_cast %40 : vector<1x32x512xbf16> to vector<32x512xbf16>
    %cst_41 = arith.constant dense<0.000000e+00> : vector<16x512xf32>
    %42 = tpu.matmul %32, %41, %cst_41 {dimension_numbers = #tpu.dot_dimension_numbers<[1], [0], [0], [1], [0, 0, 1, 1], [], []>} : vector<16x32xbf16>, vector<32x512xbf16>, vector<16x512xf32> -> vector<16x512xf32>
    %43 = arith.addf %39, %42 : vector<16x512xf32>
    %44 = arith.addf %24, %43 : vector<16x512xf32>
    %45 = vector.extract_strided_slice %4 {offsets = [0, 0], sizes = [16, 1], strides = [1, 1]} : vector<16x8xf32> to vector<16x1xf32>
    %46 = vector.extract_strided_slice %44 {offsets = [0, 0], sizes = [16, 64], strides = [1, 1]} : vector<16x512xf32> to vector<16x64xf32>
    %47 = vector.broadcast %45 : vector<16x1xf32> to vector<16x64xf32>
    %48 = arith.mulf %47, %46 : vector<16x64xf32>
    %49 = vector.extract_strided_slice %4 {offsets = [0, 1], sizes = [16, 1], strides = [1, 1]} : vector<16x8xf32> to vector<16x1xf32>
    %50 = vector.extract_strided_slice %44 {offsets = [0, 64], sizes = [16, 64], strides = [1, 1]} : vector<16x512xf32> to vector<16x64xf32>
    %51 = vector.broadcast %49 : vector<16x1xf32> to vector<16x64xf32>
    %52 = arith.mulf %51, %50 : vector<16x64xf32>
    %53 = arith.addf %48, %52 : vector<16x64xf32>
    %54 = vector.extract_strided_slice %4 {offsets = [0, 2], sizes = [16, 1], strides = [1, 1]} : vector<16x8xf32> to vector<16x1xf32>
    %55 = vector.extract_strided_slice %44 {offsets = [0, 128], sizes = [16, 64], strides = [1, 1]} : vector<16x512xf32> to vector<16x64xf32>
    %56 = vector.broadcast %54 : vector<16x1xf32> to vector<16x64xf32>
    %57 = arith.mulf %56, %55 : vector<16x64xf32>
    %58 = arith.addf %53, %57 : vector<16x64xf32>
    %59 = vector.extract_strided_slice %4 {offsets = [0, 3], sizes = [16, 1], strides = [1, 1]} : vector<16x8xf32> to vector<16x1xf32>
    %60 = vector.extract_strided_slice %44 {offsets = [0, 192], sizes = [16, 64], strides = [1, 1]} : vector<16x512xf32> to vector<16x64xf32>
    %61 = vector.broadcast %59 : vector<16x1xf32> to vector<16x64xf32>
    %62 = arith.mulf %61, %60 : vector<16x64xf32>
    %63 = arith.addf %58, %62 : vector<16x64xf32>
    %64 = vector.extract_strided_slice %4 {offsets = [0, 4], sizes = [16, 1], strides = [1, 1]} : vector<16x8xf32> to vector<16x1xf32>
    %65 = vector.extract_strided_slice %44 {offsets = [0, 256], sizes = [16, 64], strides = [1, 1]} : vector<16x512xf32> to vector<16x64xf32>
    %66 = vector.broadcast %64 : vector<16x1xf32> to vector<16x64xf32>
    %67 = arith.mulf %66, %65 : vector<16x64xf32>
    %68 = arith.addf %63, %67 : vector<16x64xf32>
    %69 = vector.extract_strided_slice %4 {offsets = [0, 5], sizes = [16, 1], strides = [1, 1]} : vector<16x8xf32> to vector<16x1xf32>
    %70 = vector.extract_strided_slice %44 {offsets = [0, 320], sizes = [16, 64], strides = [1, 1]} : vector<16x512xf32> to vector<16x64xf32>
    %71 = vector.broadcast %69 : vector<16x1xf32> to vector<16x64xf32>
    %72 = arith.mulf %71, %70 : vector<16x64xf32>
    %73 = arith.addf %68, %72 : vector<16x64xf32>
    %74 = vector.extract_strided_slice %4 {offsets = [0, 6], sizes = [16, 1], strides = [1, 1]} : vector<16x8xf32> to vector<16x1xf32>
    %75 = vector.extract_strided_slice %44 {offsets = [0, 384], sizes = [16, 64], strides = [1, 1]} : vector<16x512xf32> to vector<16x64xf32>
    %76 = vector.broadcast %74 : vector<16x1xf32> to vector<16x64xf32>
    %77 = arith.mulf %76, %75 : vector<16x64xf32>
    %78 = arith.addf %73, %77 : vector<16x64xf32>
    %79 = vector.extract_strided_slice %4 {offsets = [0, 7], sizes = [16, 1], strides = [1, 1]} : vector<16x8xf32> to vector<16x1xf32>
    %80 = vector.extract_strided_slice %44 {offsets = [0, 448], sizes = [16, 64], strides = [1, 1]} : vector<16x512xf32> to vector<16x64xf32>
    %81 = vector.broadcast %79 : vector<16x1xf32> to vector<16x64xf32>
    %82 = arith.mulf %81, %80 : vector<16x64xf32>
    %83 = arith.addf %78, %82 : vector<16x64xf32>
    %c0_42 = arith.constant 0 : index
    %c0_43 = arith.constant 0 : index
    %84 = vector.load %arg4[%c0_42, %c0_43] : memref<16x64xf32, #tpu.memory_space<vmem>>, vector<16x64xf32>
    %85 = arith.addf %83, %84 : vector<16x64xf32>
    %86 = arith.negf %85 : vector<16x64xf32>
    %87 = math.exp %86 : vector<16x64xf32>
    %cst_44 = arith.constant 1.000000e+00 : f32
    %88 = vector.broadcast %cst_44 : f32 to vector<16x64xf32>
    %89 = arith.addf %88, %87 : vector<16x64xf32>
    %90 = arith.divf %88, %89 : vector<16x64xf32>
    %91 = vector.extract_strided_slice %90 {offsets = [0, 0], sizes = [16, 32], strides = [1, 1]} : vector<16x64xf32> to vector<16x32xf32>
    %92 = vector.extract_strided_slice %90 {offsets = [0, 32], sizes = [16, 32], strides = [1, 1]} : vector<16x64xf32> to vector<16x32xf32>
    %93 = arith.mulf %91, %2 : vector<16x32xf32>
    %94 = arith.truncf %93 : vector<16x32xf32> to vector<16x32xbf16>
    %95 = vector.extract_strided_slice %23 {offsets = [0, 512], sizes = [16, 256], strides = [1, 1]} : vector<16x768xf32> to vector<16x256xf32>
    %c1_45 = arith.constant 1 : index
    %c0_46 = arith.constant 0 : index
    %c0_47 = arith.constant 0 : index
    %96 = vector.load %arg6[%c1_45, %c0_46, %c0_47] : memref<3x16x16xbf16, #tpu.memory_space<vmem>>, vector<1x16x16xbf16>
    %97 = vector.shape_cast %96 : vector<1x16x16xbf16> to vector<16x16xbf16>
    %cst_48 = arith.constant dense<0.000000e+00> : vector<16x32xf32>
    %98 = tpu.matmul %97, %94, %cst_48 {dimension_numbers = #tpu.dot_dimension_numbers<[1], [0], [0], [1], [0, 0, 1, 1], [], []>} : vector<16x16xbf16>, vector<16x32xbf16>, vector<16x32xf32> -> vector<16x32xf32>
    %99 = arith.truncf %98 : vector<16x32xf32> to vector<16x32xbf16>
    %c2_49 = arith.constant 2 : index
    %c0_50 = arith.constant 0 : index
    %c0_51 = arith.constant 0 : index
    %100 = vector.load %arg6[%c2_49, %c0_50, %c0_51] : memref<3x16x16xbf16, #tpu.memory_space<vmem>>, vector<1x16x16xbf16>
    %101 = vector.shape_cast %100 : vector<1x16x16xbf16> to vector<16x16xbf16>
    %cst_52 = arith.constant dense<0.000000e+00> : vector<16x32xf32>
    %102 = tpu.matmul %101, %94, %cst_52 {dimension_numbers = #tpu.dot_dimension_numbers<[1], [0], [0], [1], [0, 0, 1, 1], [], []>} : vector<16x16xbf16>, vector<16x32xbf16>, vector<16x32xf32> -> vector<16x32xf32>
    %103 = arith.truncf %102 : vector<16x32xf32> to vector<16x32xbf16>
    %c0_53 = arith.constant 0 : index
    %c0_54 = arith.constant 0 : index
    %c0_55 = arith.constant 0 : index
    %104 = vector.load %arg9[%c0_53, %c0_54, %c0_55] : memref<3x32x256xbf16, #tpu.memory_space<vmem>>, vector<1x32x256xbf16>
    %105 = vector.shape_cast %104 : vector<1x32x256xbf16> to vector<32x256xbf16>
    %cst_56 = arith.constant dense<0.000000e+00> : vector<16x256xf32>
    %106 = tpu.matmul %94, %105, %cst_56 {dimension_numbers = #tpu.dot_dimension_numbers<[1], [0], [0], [1], [0, 0, 1, 1], [], []>} : vector<16x32xbf16>, vector<32x256xbf16>, vector<16x256xf32> -> vector<16x256xf32>
    %c1_57 = arith.constant 1 : index
    %c0_58 = arith.constant 0 : index
    %c0_59 = arith.constant 0 : index
    %107 = vector.load %arg9[%c1_57, %c0_58, %c0_59] : memref<3x32x256xbf16, #tpu.memory_space<vmem>>, vector<1x32x256xbf16>
    %108 = vector.shape_cast %107 : vector<1x32x256xbf16> to vector<32x256xbf16>
    %cst_60 = arith.constant dense<0.000000e+00> : vector<16x256xf32>
    %109 = tpu.matmul %99, %108, %cst_60 {dimension_numbers = #tpu.dot_dimension_numbers<[1], [0], [0], [1], [0, 0, 1, 1], [], []>} : vector<16x32xbf16>, vector<32x256xbf16>, vector<16x256xf32> -> vector<16x256xf32>
    %110 = arith.addf %106, %109 : vector<16x256xf32>
    %c2_61 = arith.constant 2 : index
    %c0_62 = arith.constant 0 : index
    %c0_63 = arith.constant 0 : index
    %111 = vector.load %arg9[%c2_61, %c0_62, %c0_63] : memref<3x32x256xbf16, #tpu.memory_space<vmem>>, vector<1x32x256xbf16>
    %112 = vector.shape_cast %111 : vector<1x32x256xbf16> to vector<32x256xbf16>
    %cst_64 = arith.constant dense<0.000000e+00> : vector<16x256xf32>
    %113 = tpu.matmul %103, %112, %cst_64 {dimension_numbers = #tpu.dot_dimension_numbers<[1], [0], [0], [1], [0, 0, 1, 1], [], []>} : vector<16x32xbf16>, vector<32x256xbf16>, vector<16x256xf32> -> vector<16x256xf32>
    %114 = arith.addf %110, %113 : vector<16x256xf32>
    %115 = arith.addf %95, %114 : vector<16x256xf32>
    %116 = vector.extract_strided_slice %4 {offsets = [0, 0], sizes = [16, 1], strides = [1, 1]} : vector<16x8xf32> to vector<16x1xf32>
    %117 = vector.extract_strided_slice %115 {offsets = [0, 0], sizes = [16, 32], strides = [1, 1]} : vector<16x256xf32> to vector<16x32xf32>
    %118 = vector.broadcast %116 : vector<16x1xf32> to vector<16x32xf32>
    %119 = arith.mulf %118, %117 : vector<16x32xf32>
    %120 = vector.extract_strided_slice %4 {offsets = [0, 1], sizes = [16, 1], strides = [1, 1]} : vector<16x8xf32> to vector<16x1xf32>
    %121 = vector.extract_strided_slice %115 {offsets = [0, 32], sizes = [16, 32], strides = [1, 1]} : vector<16x256xf32> to vector<16x32xf32>
    %122 = vector.broadcast %120 : vector<16x1xf32> to vector<16x32xf32>
    %123 = arith.mulf %122, %121 : vector<16x32xf32>
    %124 = arith.addf %119, %123 : vector<16x32xf32>
    %125 = vector.extract_strided_slice %4 {offsets = [0, 2], sizes = [16, 1], strides = [1, 1]} : vector<16x8xf32> to vector<16x1xf32>
    %126 = vector.extract_strided_slice %115 {offsets = [0, 64], sizes = [16, 32], strides = [1, 1]} : vector<16x256xf32> to vector<16x32xf32>
    %127 = vector.broadcast %125 : vector<16x1xf32> to vector<16x32xf32>
    %128 = arith.mulf %127, %126 : vector<16x32xf32>
    %129 = arith.addf %124, %128 : vector<16x32xf32>
    %130 = vector.extract_strided_slice %4 {offsets = [0, 3], sizes = [16, 1], strides = [1, 1]} : vector<16x8xf32> to vector<16x1xf32>
    %131 = vector.extract_strided_slice %115 {offsets = [0, 96], sizes = [16, 32], strides = [1, 1]} : vector<16x256xf32> to vector<16x32xf32>
    %132 = vector.broadcast %130 : vector<16x1xf32> to vector<16x32xf32>
    %133 = arith.mulf %132, %131 : vector<16x32xf32>
    %134 = arith.addf %129, %133 : vector<16x32xf32>
    %135 = vector.extract_strided_slice %4 {offsets = [0, 4], sizes = [16, 1], strides = [1, 1]} : vector<16x8xf32> to vector<16x1xf32>
    %136 = vector.extract_strided_slice %115 {offsets = [0, 128], sizes = [16, 32], strides = [1, 1]} : vector<16x256xf32> to vector<16x32xf32>
    %137 = vector.broadcast %135 : vector<16x1xf32> to vector<16x32xf32>
    %138 = arith.mulf %137, %136 : vector<16x32xf32>
    %139 = arith.addf %134, %138 : vector<16x32xf32>
    %140 = vector.extract_strided_slice %4 {offsets = [0, 5], sizes = [16, 1], strides = [1, 1]} : vector<16x8xf32> to vector<16x1xf32>
    %141 = vector.extract_strided_slice %115 {offsets = [0, 160], sizes = [16, 32], strides = [1, 1]} : vector<16x256xf32> to vector<16x32xf32>
    %142 = vector.broadcast %140 : vector<16x1xf32> to vector<16x32xf32>
    %143 = arith.mulf %142, %141 : vector<16x32xf32>
    %144 = arith.addf %139, %143 : vector<16x32xf32>
    %145 = vector.extract_strided_slice %4 {offsets = [0, 6], sizes = [16, 1], strides = [1, 1]} : vector<16x8xf32> to vector<16x1xf32>
    %146 = vector.extract_strided_slice %115 {offsets = [0, 192], sizes = [16, 32], strides = [1, 1]} : vector<16x256xf32> to vector<16x32xf32>
    %147 = vector.broadcast %145 : vector<16x1xf32> to vector<16x32xf32>
    %148 = arith.mulf %147, %146 : vector<16x32xf32>
    %149 = arith.addf %144, %148 : vector<16x32xf32>
    %150 = vector.extract_strided_slice %4 {offsets = [0, 7], sizes = [16, 1], strides = [1, 1]} : vector<16x8xf32> to vector<16x1xf32>
    %151 = vector.extract_strided_slice %115 {offsets = [0, 224], sizes = [16, 32], strides = [1, 1]} : vector<16x256xf32> to vector<16x32xf32>
    %152 = vector.broadcast %150 : vector<16x1xf32> to vector<16x32xf32>
    %153 = arith.mulf %152, %151 : vector<16x32xf32>
    %154 = arith.addf %149, %153 : vector<16x32xf32>
    %c0_65 = arith.constant 0 : index
    %c0_66 = arith.constant 0 : index
    %155 = vector.load %arg5[%c0_65, %c0_66] : memref<16x32xf32, #tpu.memory_space<vmem>>, vector<16x32xf32>
    %156 = arith.addf %154, %155 : vector<16x32xf32>
    %157 = math.tanh %156 : vector<16x32xf32>
    %158 = arith.mulf %92, %2 : vector<16x32xf32>
    %cst_67 = arith.constant 1.000000e+00 : f32
    %159 = vector.broadcast %cst_67 : f32 to vector<16x32xf32>
    %160 = arith.subf %159, %92 : vector<16x32xf32>
    %161 = arith.mulf %160, %157 : vector<16x32xf32>
    %162 = arith.addf %158, %161 : vector<16x32xf32>
    %c0_68 = arith.constant 0 : index
    %c0_69 = arith.constant 0 : index
    %163 = vector.load %arg10[%c0_68, %c0_69] : memref<16x32xf32, #tpu.memory_space<vmem>>, vector<16x32xf32>
    tpu.vector_store %arg10[%c0_68, %c0_69], %162 {strides = array<i32>} : memref<16x32xf32, #tpu.memory_space<vmem>>, vector<16x32xf32>,
    return
  }
  func.func @transform_0(%arg0: i32) -> (i32, i32) {
    %c0_i32 = arith.constant 0 : i32
    %c0_i32_0 = arith.constant 0 : i32
    return %arg0, %c0_i32 : i32, i32
  }
  func.func @transform_1(%arg0: i32) -> (i32, i32) {
    %c0_i32 = arith.constant 0 : i32
    %c0_i32_0 = arith.constant 0 : i32
    return %arg0, %c0_i32 : i32, i32
  }
  func.func @transform_2(%arg0: i32) -> (i32, i32) {
    %c0_i32 = arith.constant 0 : i32
    %c0_i32_0 = arith.constant 0 : i32
    %c0_i32_1 = arith.constant 0 : i32
    return %c0_i32, %c0_i32_0 : i32, i32
  }
  func.func @transform_3(%arg0: i32) -> (i32, i32) {
    %c0_i32 = arith.constant 0 : i32
    %c0_i32_0 = arith.constant 0 : i32
    %c0_i32_1 = arith.constant 0 : i32
    return %c0_i32, %c0_i32_0 : i32, i32
  }
  func.func @transform_4(%arg0: i32) -> (i32, i32) {
    %c0_i32 = arith.constant 0 : i32
    %c0_i32_0 = arith.constant 0 : i32
    %c0_i32_1 = arith.constant 0 : i32
    return %c0_i32, %c0_i32_0 : i32, i32
  }
  func.func @transform_5(%arg0: i32) -> (i32, i32, i32) {
    %c0_i32 = arith.constant 0 : i32
    %c0_i32_0 = arith.constant 0 : i32
    %c0_i32_1 = arith.constant 0 : i32
    %c0_i32_2 = arith.constant 0 : i32
    return %c0_i32, %c0_i32_0, %c0_i32_1 : i32, i32, i32
  }
  func.func @transform_6(%arg0: i32) -> (i32, i32, i32) {
    %c0_i32 = arith.constant 0 : i32
    %c0_i32_0 = arith.constant 0 : i32
    %c0_i32_1 = arith.constant 0 : i32
    %c0_i32_2 = arith.constant 0 : i32
    return %c0_i32, %c0_i32_0, %c0_i32_1 : i32, i32, i32
  }
  func.func @transform_7(%arg0: i32) -> (i32, i32, i32) {
    %c0_i32 = arith.constant 0 : i32
    %c0_i32_0 = arith.constant 0 : i32
    %c0_i32_1 = arith.constant 0 : i32
    %c0_i32_2 = arith.constant 0 : i32
    return %c0_i32, %c0_i32_0, %c0_i32_1 : i32, i32, i32
  }
  func.func @transform_8(%arg0: i32) -> (i32, i32, i32) {
    %c0_i32 = arith.constant 0 : i32
    %c0_i32_0 = arith.constant 0 : i32
    %c0_i32_1 = arith.constant 0 : i32
    %c0_i32_2 = arith.constant 0 : i32
    return %c0_i32, %c0_i32_0, %c0_i32_1 : i32, i32, i32
  }
  func.func @transform_9(%arg0: i32) -> (i32, i32) {
    %c0_i32 = arith.constant 0 : i32
    %c0_i32_0 = arith.constant 0 : i32
    return %arg0, %c0_i32 : i32, i32
  }
}

</mosaic_0001>

<bundles_post_ra>
// kernel: dspa_cell.1
= control target key start
LH: loop header
LB: loop body
LE: loop exit
PB: predicated region body
PF: predicated region fallthrough
CT: control target
= control target key end

     0   :  { %14 = vsyncpa [#allocation3], 0  ;;  %s3186_s0 = inlined_call_operand.vmem [shape: f32[32,4], index: 0, kind: input, shape index: {}]   ;;  %s3187_s1 = inlined_call_operand.vmem [shape: f32[32,32], index: 1, kind: input, shape index: {}]   ;;  %s3188_s2 = inlined_call_operand.vmem [shape: f32[16,8], index: 2, kind: input, shape index: {}]   ;;  %s3189_s3 = inlined_call_operand.vmem [shape: f32[16,64], index: 3, kind: input, shape index: {}]   ;;  %s3190_s4 = inlined_call_operand.vmem [shape: f32[16,32], index: 4, kind: input, shape index: {}]   ;;  %s3191_s5 = inlined_call_operand.vmem [shape: bf16[3,16,16], index: 5, kind: input, shape index: {}]   ;;  %s3192_s6 = inlined_call_operand.vmem [shape: bf16[3,4,768], index: 6, kind: input, shape index: {}]   ;;  %s3193_s7 = inlined_call_operand.vmem [shape: bf16[3,32,512], index: 7, kind: input, shape index: {}]   ;;  %s3194_s8 = inlined_call_operand.vmem [shape: bf16[3,32,256], index: 8, kind: input, shape index: {}]   ;;  %s3195_s9 = inlined_call_operand.hbm [shape: f32[32,32], index: 9, kind: output, shape index: {}]  }
   0x1   :  { %16 = vsyncpa [#allocation3 + $0x1], 0  ;;  %s2698_s30 = smov 0   ;;  %s2700_s10 = smov 0  }
   0x2   :  { %s2702_s11 = smov 0   ;;  %s2704_s12 = smov 0  }
   0x3 LB: > { %s2719_s13 = sadd.s32 4294967295, %s2629_s12   ;;  %s2196_s14 = sadd.s32 4294967294, %s2629_s12   ;;  %s2629_s12 = sphi %s2704_s12, %s3201_s12   ;;  %s2625_s11 = sphi %s2702_s11, %s3200_s11   ;;  %s2621_s10 = sphi %s2700_s10, %s3199_s10   ;;  %s2617_s30 = sphi %s2698_s30, %s3198_s30  }
   0x4   : > { %s2723_s15 = sadd.s32 1, %s2629_s12   ;;  %s228_s16 = sadd.s32 1, %s2625_s11 }
   0x5   : > { %s225_s17 = ssub.s32 %s2629_s12, %s2723_s15  ;;  %p238_p0 = scmp.ne.s32.totalorder %s2625_s11, %s2621_s10 }
   0x6   : > { %p226_p1 = scmp.eq.s32.totalorder %s225_s17, 0  ;;  %p239_p2 = scmp.eq.s32.totalorder %s2719_s13, 1 }
   0x7   : > { %p244_p3 = scmp.ne.s32.totalorder %s2621_s10, %s2617_s30  ;;  %p245_p4 = scmp.eq.s32.totalorder %s2196_s14, 1 }
   0x8   : > { %s2734_s18 = scalar_select %p226_p1, %s2625_s11, %s228_s16  }
   0x9   : > { %p2736_p5 = por %p239_p2, %p238_p0  ;;  %p2740_p6 = por %p245_p4, %p244_p3 }
   0xa   : > { %p2199_p7 = scmp.ge.s32.totalorder %s2629_s12, 1  ;;  %p302_p8 = scmp.lt.s32.totalorder %s2629_s12, 3 }
   0xc   : > { %p303_p9 = pnand %p2199_p7, %p302_p8 }
   0xd   : > { %s2201_s21 = sshll.u32 (!%p303_p9), %s2719_s13, 1  ;;  %v2631_v0 = vmov (!%p303_p9), 0.0   ;;  %vm2632_vm0 = vmmov (!%p303_p9), 0   ;;  %v2761_v3 = vld [vmem:[%s3191_s5 + $0x8] sm:$0xff] (!%p303_p9)   ;;  %vm373_vm1 = vcmask (!%p303_p9), 130048   ;;  %v2775_v5 = vld [vmem:[%s3191_s5 + $0x10] sm:$0xff] (!%p303_p9)   ;;  %v483_v8 = vlaneseq (!%p303_p9) }
   0xe   : > { %306 = sbr.rel (%p303_p9) target bundleno = 1766 (0x6e6), region = 56  ;;  %2331 = vmatprep.subr.bf16.mxu1 (!%p303_p9), %v2631_v0  ;;  %p344_p10 = scmp.lt.s32.totalorder (!%p303_p9), %s2201_s21, 3  ;;  %2333 = vmatprep.mubr.msk.bf16.mxu1 (!%p303_p9), %vm2632_vm0, %v2631_v0  ;;  %v2633_v6 = vmov (!%p303_p9), 1983009808   ;;  %v2213_v12 = vld [vmem:[%s3192_s6 + $0xc] sm:$0xff] (!%p303_p9)  ;;  %vm508_vm2 = vcmask (!%p303_p9), 1041408  }
   0xf   : > { %v481_v7 = vunpack.c.l.s4 (!%p303_p9), %v2633_v6  ;;  %v484_v10 = vshrl.u32 (!%p303_p9), %v483_v8, 7  ;;  %v2215_v14 = vld.sshfl [vmem:[%s3192_s6 + $0x14] sm:$0x33 pattern:$0x76325410] (!%p303_p9)  ;;  %v479_v19 = vcombine.high (!%p303_p9), %v2213_v12, %v2213_v12  ;;  %v2634_v20 = vmov (!%p303_p9), 0  }
  0x10   : > { %v503_v16 = vcombine.high (!%p303_p9), %v2215_v14, %v2215_v14  ;;  %v522_v18 = vsel (!%p303_p9), %vm508_vm2, %v2215_v14, 0  ;;  %645 = vmatprep.mubr.bf16.mxu0 (!%p303_p9), %v2634_v20  ;;  %v472_v21 = vld [vmem:[%s3192_s6] sm:$0xff] (!%p303_p9)  ;;  %v2222_v30 = vld.sshfl [vmem:[%s3192_s6 + $0x8] sm:$0x33 pattern:$0x76325410] (!%p303_p9) }
  0x11   : > { %v482_v9 = vunpack.c.0.s8 (!%p303_p9), %v481_v7  ;;  %v658_v26 = vcombine.high (!%p303_p9), %v472_v21, %v472_v21  ;;  %vm504_vm3 = vcmask (!%p303_p9), 31744   ;;  %v2229_v36 = vld [vmem:[%s3192_s6 + $0x18] sm:$0xff] (!%p303_p9)  ;;  %v682_v38 = vcombine.high (!%p303_p9), %v2222_v30, %v2222_v30  ;;  %v2231_v51 = vld.sshfl [vmem:[%s3192_s6 + $0x20] sm:$0x33 pattern:$0x76325410] (!%p303_p9) }
  0x12   : > { %2220 = vmatprep.subr.msk.bf16.mxu0 (!%p303_p9), %vm508_vm2, %v503_v16  ;;  %v838_v39 = vcombine.high (!%p303_p9), %v2229_v36, %v2229_v36  ;;  %v699_v46 = vsel (!%p303_p9), %vm508_vm2, %v2222_v30, 0  ;;  %v862_v53 = vcombine.high (!%p303_p9), %v2231_v51, %v2231_v51  ;;  %v879_v55 = vsel (!%p303_p9), %vm508_vm2, %v2231_v51, 0  ;;  %v2501_v59 = vld [vmem:[%s3193_s7 + $0x40] ss:$16 sps:$4 sm:$0xff] (!%p303_p9)   ;;  %v2503_v60 = vld [vmem:[%s3193_s7 + $0x44] ss:$16 sps:$4 sm:$0xff] (!%p303_p9)  }
  0x13   : > { %v485_v11 = vsub.s32 (!%p303_p9), %v482_v9, %v484_v10  ;;  %614 = vmatpush1.bf16.msra.mxu0 (!%p303_p9), %v522_v18  ;;  %v2504_v61 = vld [vmem:[%s3193_s7 + $0x48] ss:$16 sps:$4 sm:$0xff] (!%p303_p9)   ;;  %v2506_v62 = vld [vmem:[%s3193_s7 + $0x4c] ss:$16 sps:$4 sm:$0xff] (!%p303_p9)   ;;  %v2509_v63 = vld [vmem:[%s3193_s7 + $0x64] ss:$16 sps:$4 sm:$0xff] (!%p303_p9)  }
  0x14   : > { %v2515_v6 = vld [vmem:[%s3193_s7 + $0x4] ss:$16 sps:$4 sm:$0xff] (!%p303_p9)   ;;  %v2518_v7 = vld [vmem:[%s3193_s7 + $0xc] ss:$16 sps:$4 sm:$0xff] (!%p303_p9)   ;;  %v2635_v9 = vmov (!%p303_p9), 3   ;;  %v2636_v10 = vmov (!%p303_p9), 1  }
  0x15   : > { %s3203_s21 = smov (!%p344_p10, %s2201_s21), 3  ;;  %v486_v13 = vrot.slane %v2213_v12, %v485_v11  ;;  %v493_v22 = vrot.slane %v479_v19, %v485_v11  ;;  %v665_v23 = vrot.slane %v472_v21, %v485_v11  ;;  %v672_v27 = vrot.slane %v658_v26, %v485_v11  ;;  %v363_v8 = vld [vmem:[%s3188_s2] sm:$0xff]  ;;  %2483 = vset.pattern.permute.xlu1 %v2635_v9  ;;  %v2516_v26 = vld [vmem:[%s3193_s7 + $0x8] ss:$16 sps:$4 sm:$0xff]   ;;  %v2524_v30 = vld [vmem:[%s3193_s7 + $0x2c] ss:$16 sps:$4 sm:$0xff]  }
  0x16   : > { %s2202_s22 = sshll.u32 %s3203_s21, 3  ;;  %v845_v41 = vrot.slane %v2229_v36, %v485_v11  ;;  %v852_v42 = vrot.slane %v838_v39, %v485_v11  ;;  %2482 = vset.pattern.permute.xlu0 %v2636_v10  ;;  %1584 = vperm.xlu1 %2483, %v363_v8   ;;  %v364_v11 = vld [vmem:[%s3188_s2 + $0x8] sm:$0xff]  ;;  %v2637_v12 = vmov 5   ;;  %v2639_v14 = vmov 2   ;;  %s2642_s27 = smov 64  }
  0x17   : > { %s347_s25 = scalar_lea.vmem %s3186_s0, %s2202_s22  ;;  %v494_v15 = vcombine.high %v486_v13, %v486_v13  ;;  %v510_v17 = vsel %vm508_vm2, %v486_v13, 0  ;;  %v495_v24 = vcombine.high %v493_v22, %v493_v22  ;;  %v673_v25 = vcombine.high %v665_v23, %v665_v23  ;;  %s353_s24 = scalar_lea.vmem %s3187_s1, %s2202_s22  ;;  %1552 = vperm.xlu0 %2482, %v363_v8  }
  0x18   : > { %v357_v1 = vld [vmem:[%s347_s25] sm:$0xff]  ;;  %v358_v2 = vld [vmem:[%s347_s25 + $0x8] sm:$0xff]  ;;  %v516_v34 = vsel %vm508_vm2, %v493_v22, 0  ;;  %v687_v35 = vsel %vm508_vm2, %v665_v23, 0  ;;  %v674_v37 = vcombine.high %v672_v27, %v672_v27  ;;  %v693_v45 = vsel %vm508_vm2, %v672_v27, 0  ;;  %s2644_s21 = smov 32  }
  0x19   : > { %v2763_v4 = vpack.c.bf16 %v358_v2, %v357_v1  ;;  %2223 = vmatprep.subr.msk.bf16.mxu0 %vm508_vm2, %v673_v25  ;;  %v853_v49 = vcombine.high %v845_v41, %v845_v41  ;;  %v854_v50 = vcombine.high %v852_v42, %v852_v42  ;;  %v867_v52 = vsel %vm508_vm2, %v845_v41, 0  ;;  %v2840_v56 = vld [vmem:[%s353_s24] sm:$0xff]  ;;  %v2842_v57 = vld [vmem:[%s353_s24 + $0x8] sm:$0xff]  ;;  %s2643_s24 = smov 96   ;;  %s340_s28 = sand.u32 1, %s2621_s10  }
  0x1a   : > { %v873_v54 = vsel %vm508_vm2, %v852_v42, 0  ;;  %v2846_v58 = vpack.c.bf16 %v2842_v57, %v2840_v56  ;;  %v2512_v1 = vld [vmem:[%s3193_s7 + $0x6c] ss:$16 sps:$4 sm:$0xff]   ;;  %v2507_v2 = vld [vmem:[%s3193_s7 + $0x60] ss:$16 sps:$4 sm:$0xff]   ;;  %1588 = vperm.xlu1 %2483, %v364_v11   ;;  %v2638_v13 = vmov 7  }
  0x1b   : > { %2332 = vmatpush3.bf16.msra.mxu1 %v2763_v4  ;;  %1556 = vperm.xlu0 %2482, %v364_v11   ;;  %v2641_v16 = vmov 6   ;;  %vm1166_vm4 = vcmask 261120   ;;  %v2513_v25 = vld [vmem:[%s3193_s7] ss:$16 sps:$4 sm:$0xff]   ;;  %v2528_v41 = vld [vmem:[%s3193_s7 + $0x88] ss:$16 sps:$4 sm:$0xff]  }
  0x1c   : > { %2337 = vmatprep.subr.bf16.mxu1 %v2631_v0  ;;  %v2533_v42 = vld [vmem:[%s3193_s7 + $0xa4] ss:$16 sps:$4 sm:$0xff]   ;;  %s2200_s29 = sshll.u32 %s340_s28, 4  ;;  %s2318_s17 = sshll.u32 %s2719_s13, 8 }
  0x1d   : > { %s342_s14 = scalar_lea.vmem [#allocation2], %s2200_s29  ;;  %s2645_s13 = smov [#allocation2]  }
  0x1e   : > { %2334 = vmatmul.mubr.msk.bf16.vlgmr.msra.gmra.mrb[0].mxu1 %vm373_vm1, %v2761_v3  ;;  %2485 = vset.pattern.permute.xlu1 %v2637_v12  ;;  %s2122_s16 = sshll.u32 %s342_s14, 4  ;;  %s2571_s25 = sshll.u32 %s2645_s13, 4  ;;  %s3136_s16 = int_to_ptr.vmem [resolvable:$true] %s2122_s16  ;;  %s2572_s25 = int_to_ptr.vmem [resolvable:$false] %s2571_s25 }
  0x1f   : > { %2338 = vmatpush3.bf16.msra.mxu1 %v2763_v4  ;;  %2339 = vmatprep.mubr.msk.bf16.mxu1 %vm2632_vm0, %v2631_v0  ;;  %s2567_s22 = scalar_lea.vmem %s3136_s16, 256  ;;  %s2573_s26 = scalar_lea.vmem %s2572_s25, 512 }
  0x20   : > { %2216 = vmatprep.subr.msk.bf16.mxu1 %vm508_vm2, %v494_v15  ;;  %2484 = vset.pattern.permute.xlu0 %v2637_v12  ;;  %v2640_v15 = vmov 4   ;;  %p2568_p11 = scmp.ne.s32.totalorder %s3136_s16, %s2567_s22  ;;  %p2574_p0 = scmp.lt.s32.totalorder %s3136_s16, %s2572_s25 }
  0x21   : > { %1620 = vperm.xlu1 %2485, %v364_v11   ;;  %1616 = vperm.xlu0 %2484, %v363_v8   ;;  %p2575_p1 = scmp.lt.s32.totalorder %s2573_s26, %s2567_s22 }
  0x22   : > { %p2569_p12 = pnand %p2568_p11, %p2736_p5 }
  0x23   : > { %p2576_p2 = por %p2575_p1, %p2574_p0 }
  0x24   : > { %p2570_p13 = pneg %p2569_p12 }
  0x25   : > { %2486 = vset.pattern.permute.xlu1 %v2638_v13  ;;  %2487 = vset.pattern.permute.xlu0 %v2638_v13 }
  0x26   : > { %2340 = vmatmul.mubr.msk.bf16.vlgmr.msra.gmra.mrb[4].mxu1 %vm373_vm1, %v2775_v5  ;;  %1648 = vperm.xlu1 %2486, %v363_v8   ;;  %p2577_p3 = pnand %p2576_p2, %p2570_p13 }
  0x27   : > { %528 = vmatpush1.bf16.msra.mxu1 %v510_v17  ;;  %559 = vmatprep.mubr.bf16.mxu1 %v2634_v20 }
  0x28   : > { %2218 = vmatprep.subr.msk.bf16.mxu1 %vm508_vm2, %v495_v24  ;;  %1652 = vperm.xlu0 %2487, %v364_v11  }
  0x2a   : > { %2488 = vset.pattern.permute.xlu1 %v2634_v20 }
  0x2b   : > { %1541 = vperm.xlu1 %2488, %v363_v8  }
  0x2c   : > { %2489 = vset.pattern.permute.xlu0 %v2639_v14 }
  0x2d   : > { %1572 = vperm.xlu0 %2489, %v363_v8  }
  0x2f   : > { %1546 = vperm.xlu1 %2488, %v364_v11  }
  0x31   : > { %2492 = vset.pattern.permute.xlu0 %v2640_v15 }
  0x32   : > { %1608 = vperm.xlu0 %2492, %v364_v11  }
  0x33   : > { %2490 = vset.pattern.permute.xlu1 %v2639_v14 }
  0x34   : > { %1576 = vperm.xlu1 %2490, %v364_v11  }
  0x36   : > { %2493 = vset.pattern.permute.xlu0 %v2641_v16 }
  0x37   : > { %1636 = vperm.xlu0 %2493, %v363_v8  }
  0x38   : > { %2491 = vset.pattern.permute.xlu1 %v2640_v15 }
  0x39   : > { %1604 = vperm.xlu1 %2491, %v363_v8  }
  0x3b   : > { %2495 = vset.pattern.permute.xlu0 %v2638_v13 }
  0x3d   : > { %2494 = vset.pattern.permute.xlu1 %v2641_v16 }
  0x3e   : > { %1640 = vperm.xlu1 %2494, %v364_v11  }
  0xf1   : > { %v411_v28 = vpop.f32.mrb[0].mxu1 }
  0xf2   : > { %v2335_v29 = vpop.f32.mrb[1].mxu1 }
  0xf3   : > { %v414_v31 = vpop.f32.mrb[2].mxu1  ;;  %v2521_v29 = vld [vmem:[%s3193_s7 + $0x24] ss:$16 sps:$4 sm:$0xff]  }
  0xf4   : > { %v418_v32 = vpack.c.bf16 %v414_v31, %v411_v28  ;;  %v2336_v33 = vpop.f32.mrb[3].mxu1  ;;  %v2519_v31 = vld [vmem:[%s3193_s7 + $0x20] ss:$16 sps:$4 sm:$0xff]  }
  0xf5   : > { %v2527_v33 = vld [vmem:[%s3193_s7 + $0x84] ss:$16 sps:$4 sm:$0xff]  }
  0xf6   : > { %2217 = vmatmul.mubr.msk.bf16.vlgmr.msra.gmra.mrb[8].mxu1 %vm504_vm3, %v418_v32  ;;  %2221 = vmatmul.mubr.msk.bf16.vlgmr.msra.gmra.mrb[0].mxu0 %vm504_vm3, %v418_v32 }
  0xf7   : > { %571 = vmatpush1.bf16.msra.mxu1 %v516_v34  ;;  %705 = vmatpush1.bf16.msra.mxu0 %v687_v35  ;;  %v2530_v34 = vld [vmem:[%s3193_s7 + $0x8c] ss:$16 sps:$4 sm:$0xff]  }
  0xf8   : > { %602 = vmatprep.mubr.bf16.mxu1 %v2634_v20  ;;  %736 = vmatprep.mubr.bf16.mxu0 %v2634_v20 }
  0xf9   : > { %2225 = vmatprep.subr.msk.bf16.mxu1 %vm508_vm2, %v674_v37  ;;  %2227 = vmatprep.subr.msk.bf16.mxu0 %vm508_vm2, %v682_v38  ;;  %v464_v40 = vpop.f32.mrb[4].mxu1 }
  0xfa   : > { %v2341_v43 = vpop.f32.mrb[5].mxu1 }
  0xfb   : > { %v467_v44 = vpop.f32.mrb[6].mxu1  ;;  %v2536_v43 = vld [vmem:[%s3193_s7 + $0xac] ss:$16 sps:$4 sm:$0xff]  }
  0xfc   : > { %v471_v47 = vpack.c.bf16 %v467_v44, %v464_v40  ;;  %v2342_v48 = vpop.f32.mrb[7].mxu1  ;;  %v2525_v40 = vld [vmem:[%s3193_s7 + $0x80] ss:$16 sps:$4 sm:$0xff]  }
  0xfd   : > { %v2531_v44 = vld [vmem:[%s3193_s7 + $0xa0] ss:$16 sps:$4 sm:$0xff]  }
  0xfe   : > { %2219 = vmatmul.mubr.msk.bf16.vlgmr.msra.gmra.mrb[12].mxu1 %vm504_vm3, %v418_v32  ;;  %2224 = vmatmul.mubr.msk.bf16.vlgmr.msra.gmra.mrb[4].mxu0 %vm504_vm3, %v2763_v4  ;;  %v2522_v32 = vld [vmem:[%s3193_s7 + $0x28] ss:$16 sps:$4 sm:$0xff]  }
  0xff   : > { %748 = vmatpush1.bf16.msra.mxu1 %v693_v45  ;;  %791 = vmatpush1.bf16.msra.mxu0 %v699_v46  ;;  %v2534_v45 = vld [vmem:[%s3193_s7 + $0xa8] ss:$16 sps:$4 sm:$0xff]   ;;  %v2968_v46 = vpop.permute.xlu1 %1584 }
 0x100   : > { %822 = vmatprep.mubr.bf16.mxu0 %v2634_v20  ;;  %779 = vmatprep.mubr.bf16.mxu1 %v2634_v20 }
 0x101   : > { %2232 = vmatprep.subr.msk.bf16.mxu0 %vm508_vm2, %v853_v49  ;;  %2234 = vmatprep.subr.msk.bf16.mxu1 %vm508_vm2, %v854_v50 }
 0x103   : > { %v2972_v48 = vpop.permute.xlu1 %1588 }
 0x106   : > { %2228 = vmatmul.mubr.msk.bf16.vlgmr.msra.gmra.mrb[0].mxu0 %vm504_vm3, %v2763_v4 }
 0x107   : > { %885 = vmatpush1.bf16.msra.mxu0 %v867_v52  ;;  %916 = vmatprep.mubr.bf16.mxu0 %v2634_v20 }
 0x108   : > { %2236 = vmatprep.subr.msk.bf16.mxu0 %vm508_vm2, %v862_v53 }
 0x10a   : > { %2226 = vmatmul.mubr.msk.bf16.vlgmr.msra.gmra.mrb[12].mxu1 %vm504_vm3, %v2763_v4  ;;  %v2510_v4 = vld [vmem:[%s3193_s7 + $0x68] ss:$16 sps:$4 sm:$0xff]  }
 0x10b   : > { %928 = vmatpush1.bf16.msra.mxu1 %v873_v54  ;;  %959 = vmatprep.mubr.bf16.mxu1 %v2634_v20 }
 0x10c   : > { %2343 = vmatprep.subr.bf16.mxu1 %v2631_v0 }
 0x10e   : > { %2233 = vmatmul.mubr.msk.bf16.vlgmr.msra.gmra.mrb[4].mxu0 %vm504_vm3, %v471_v47 }
 0x10f   : > { %971 = vmatpush1.bf16.msra.mxu0 %v879_v55  ;;  %1002 = vmatprep.mubr.bf16.mxu0 %v2634_v20 }
 0x110   : > { %1170 = vmatprep.subr.bf16.mxu0 %v2503_v60 }
 0x116   : > { %2235 = vmatmul.mubr.msk.bf16.vlgmr.msra.gmra.mrb[12].mxu1 %vm504_vm3, %v471_v47  ;;  %2237 = vmatmul.mubr.msk.bf16.vlgmr.msra.gmra.mrb[0].mxu0 %vm504_vm3, %v471_v47  ;;  %v2970_v47 = vpop.permute.xlu0 %1552 }
 0x117   : > { %2344 = vmatpush3.bf16.msra.mxu1 %v2846_v58  ;;  %2345 = vmatprep.mubr.msk.bf16.mxu1 %vm2632_vm0, %v2631_v0 }
 0x118   : > { %2349 = vmatprep.subr.bf16.mxu1 %v2631_v0  ;;  %1202 = vmatprep.mubr.bf16.mxu0 %v2634_v20 }
 0x119   : > { %1171 = vmatpush1.bf16.msra.mxu0 %v2501_v59 }
 0x11a   : > { %1172 = vmatprep.subr.bf16.mxu0 %v2509_v63  ;;  %v2974_v49 = vpop.permute.xlu0 %1556 }
 0x11d   : > { %1173 = vmatpush1.bf16.msra.mxu0 %v2507_v2 }
 0x11e   : > { %2346 = vmatmul.mubr.msk.bf16.vlgmr.msra.gmra.mrb[16].mxu1 %vm373_vm1, %v2761_v3  ;;  %1299 = vmatprep.subr.bf16.mxu0 %v2515_v6  ;;  %v2983_v2 = vpop.permute.xlu0 %1616  ;;  %v2987_v6 = vpop.permute.xlu1 %1620 }
 0x11f   : > { %2350 = vmatpush3.bf16.msra.mxu1 %v2846_v58  ;;  %2351 = vmatprep.mubr.msk.bf16.mxu1 %vm2632_vm0, %v2631_v0 }
 0x120   : > { %1213 = vmatprep.subr.bf16.mxu1 %v2506_v62 }
 0x122   : > { %v2993_v9 = vpop.permute.xlu0 %1652  ;;  %v3000_v12 = vpop.permute.xlu1 %1648 }
 0x126   : > { %2352 = vmatmul.mubr.msk.bf16.vlgmr.msra.gmra.mrb[20].mxu1 %vm373_vm1, %v2775_v5  ;;  %v3004_v14 = vpop.permute.xlu1 %1541 }
 0x127   : > { %1245 = vmatprep.mubr.bf16.mxu1 %v2634_v20  ;;  %1214 = vmatpush1.bf16.msra.mxu1 %v2504_v61 }
 0x128   : > { %1215 = vmatprep.subr.bf16.mxu1 %v2512_v1 }
 0x12a   : > { %v3006_v15 = vpop.permute.xlu1 %1546 }
 0x12b   : > { %1216 = vmatpush1.bf16.msra.mxu1 %v2510_v4 }
 0x12c   : > { %1342 = vmatprep.subr.bf16.mxu1 %v2518_v7 }
 0x12e   : > { %v3008_v16 = vpop.permute.xlu1 %1576 }
 0x1c9   : > { %v2900_v17 = vpop.f32.mrb[8].mxu1 }
 0x1ca   : > { %v2902_v18 = vpop.f32.mrb[9].mxu1 }
 0x1cb   : > { %v2904_v19 = vpop.f32.mrb[10].mxu1 }
 0x1cc   : > { %v2906_v21 = vpop.f32.mrb[11].mxu1 }
 0x1f1   : > { %v1059_v22 = vpop.f32.mrb[16].mxu1 }
 0x1f2   : > { %v2347_v23 = vpop.f32.mrb[17].mxu1 }
 0x1f3   : > { %v1062_v24 = vpop.f32.mrb[18].mxu1 }
 0x1f4   : > { %v1066_v27 = vpack.c.bf16 %v1062_v24, %v1059_v22  ;;  %v2348_v28 = vpop.f32.mrb[19].mxu1 }
 0x1f6   : > { %2256 = vmatmul.mubr.msk.bf16.vlgmr.msra.gmra.mrb[4].mxu0 %vm1166_vm4, %v1066_v27  ;;  %2257 = vmatmul.mubr.msk.bf16.vlgmr.msra.gmra.mrb[12].mxu1 %vm1166_vm4, %v1066_v27 }
 0x1f7   : > { %1300 = vmatpush1.bf16.msra.mxu0 %v2513_v25  ;;  %1343 = vmatpush1.bf16.msra.mxu1 %v2516_v26 }
 0x1f8   : > { %1301 = vmatprep.subr.bf16.mxu0 %v2521_v29  ;;  %1344 = vmatprep.subr.bf16.mxu1 %v2524_v30 }
 0x1f9   : > { %1331 = vmatprep.mubr.bf16.mxu0 %v2634_v20  ;;  %1374 = vmatprep.mubr.bf16.mxu1 %v2634_v20  ;;  %v1101_v35 = vpop.f32.mrb[20].mxu1 }
 0x1fa   : > { %v2353_v36 = vpop.f32.mrb[21].mxu1 }
 0x1fb   : > { %1302 = vmatpush1.bf16.msra.mxu0 %v2519_v31  ;;  %1345 = vmatpush1.bf16.msra.mxu1 %v2522_v32  ;;  %v1104_v37 = vpop.f32.mrb[22].mxu1 }
 0x1fc   : > { %1437 = vmatprep.subr.bf16.mxu0 %v2527_v33  ;;  %1480 = vmatprep.subr.bf16.mxu1 %v2530_v34  ;;  %v1108_v38 = vpack.c.bf16 %v1104_v37, %v1101_v35  ;;  %v2354_v39 = vpop.f32.mrb[23].mxu1 }
 0x202   : > { %2266 = vmatmul.mubr.msk.bf16.vlgmr.msra.gmra.mrb[4].mxu0 %vm1166_vm4, %v2846_v58  ;;  %2267 = vmatmul.mubr.msk.bf16.vlgmr.msra.gmra.mrb[12].mxu1 %vm1166_vm4, %v2846_v58 }
 0x203   : > { %1438 = vmatpush1.bf16.msra.mxu0 %v2525_v40  ;;  %1481 = vmatpush1.bf16.msra.mxu1 %v2528_v41 }
 0x204   : > { %1439 = vmatprep.subr.bf16.mxu0 %v2533_v42  ;;  %1482 = vmatprep.subr.bf16.mxu1 %v2536_v43 }
 0x205   : > { %1469 = vmatprep.mubr.bf16.mxu0 %v2634_v20  ;;  %1512 = vmatprep.mubr.bf16.mxu1 %v2634_v20 }
 0x207   : > { %1440 = vmatpush1.bf16.msra.mxu0 %v2531_v44  ;;  %1483 = vmatpush1.bf16.msra.mxu1 %v2534_v45 }
 0x208   : > { %2355 = vmatprep.subr.bf16.mxu1 %v2631_v0  ;;  %2361 = vmatprep.subr.bf16.mxu0 %v2631_v0 }
 0x20e   : > { %2284 = vmatmul.mubr.msk.bf16.vlgmr.msra.gmra.mrb[4].mxu0 %vm1166_vm4, %v1108_v38  ;;  %2285 = vmatmul.mubr.msk.bf16.vlgmr.msra.gmra.mrb[12].mxu1 %vm1166_vm4, %v1108_v38 }
 0x20f   : > { %2357 = vmatprep.mubr.msk.bf16.mxu1 %vm2632_vm0, %v2631_v0  ;;  %2363 = vmatprep.mubr.msk.bf16.mxu0 %vm2632_vm0, %v2631_v0 }
 0x2e1   : > { %v1471_v50 = vpop.f32.mrb[4].mxu0  ;;  %v1514_v51 = vpop.f32.mrb[12].mxu1 }
 0x2e2   : > { %v2367_v52 = vadd.f32 %v1471_v50, %v2900_v17  ;;  %v1473_v53 = vpop.f32.mrb[5].mxu0  ;;  %v1516_v54 = vpop.f32.mrb[13].mxu1  ;;  %v1623_v11 = vmul.f32 %v2983_v2, %v1514_v51 }
 0x2e3   : > { %v2368_v55 = vadd.f32 %v1473_v53, %v2902_v18  ;;  %v1475_v58 = vpop.f32.mrb[6].mxu0  ;;  %v1518_v59 = vpop.f32.mrb[14].mxu1  ;;  %v1655_v13 = vmul.f32 %v3000_v12, %v1516_v54 }
 0x2e4   : > { %v1559_v0 = vmul.f32 %v2367_v52, %v2970_v47  ;;  %v2369_v60 = vadd.f32 %v1475_v58, %v2904_v19  ;;  %v1477_v61 = vpop.f32.mrb[7].mxu0  ;;  %v1520_v62 = vpop.f32.mrb[15].mxu1  ;;  %v1624_v7 = vmul.f32 %v2987_v6, %v1518_v59  ;;  %v1549_v22 = vmul.f32 %v2367_v52, %v3004_v14  ;;  %v1667_v58 = vld [vmem:[%s3189_s3] sm:$0xff] }
 0x2e5   : > { %v2370_v63 = vadd.f32 %v1477_v61, %v2906_v21  ;;  %v1591_v8 = vmul.f32 %v2368_v55, %v2968_v46  ;;  %v1656_v10 = vmul.f32 %v2993_v9, %v1520_v62  ;;  %v3010_v17 = vpop.permute.xlu0 %1572  ;;  %v3012_v18 = vpop.permute.xlu1 %1604 }
 0x2e6   : > { %1563 = vrot.lane.b32.xlu1 %v1559_v0, %s2642_s27  ;;  %v1560_v4 = vmul.f32 %v2369_v60, %v2974_v49  ;;  %v1579_v25 = vmul.f32 %v2368_v55, %v3010_v17  ;;  %v1550_v27 = vmul.f32 %v2369_v60, %v3006_v15  ;;  %v1611_v35 = vmul.f32 %v3012_v18, %v1514_v51  ;;  %v1668_v51 = vld [vmem:[%s3189_s3 + $0x8] sm:$0xff] }
 0x2e7   : > { %v1592_v1 = vmul.f32 %v2370_v63, %v2972_v48  ;;  %v1580_v31 = vmul.f32 %v2370_v63, %v3008_v16 }
 0x2e9   : > { %1597 = vrot.lane.b32.xlu0 %v1592_v1, %s2642_s27  ;;  %v3014_v19 = vpop.permute.xlu0 %1608  ;;  %v3016_v21 = vpop.permute.xlu1 %1640 }
 0x2ea   : > { %1565 = vrot.lane.b32.xlu1 %v1560_v4, %s2642_s27  ;;  %v1612_v36 = vmul.f32 %v3014_v19, %v1518_v59  ;;  %v1644_v44 = vmul.f32 %v3016_v21, %v1520_v62 }
 0x2ed   : > { %1629 = vrot.lane.b32.xlu0 %v1624_v7, %s2642_s27  ;;  %v3019_v23 = vpop.permute.xlu0 %1636 }
 0x2ee   : > { %1595 = vrot.lane.b32.xlu1 %v1591_v8, %s2642_s27  ;;  %v1643_v43 = vmul.f32 %v3019_v23, %v1516_v54 }
 0x2f1   : > { %1661 = vrot.lane.b32.xlu0 %v1656_v10, %s2642_s27 }
 0x2f2   : > { %1627 = vrot.lane.b32.xlu1 %v1623_v11, %s2642_s27 }
 0x2f6   : > { %1659 = vrot.lane.b32.xlu1 %v1655_v13, %s2642_s27 }
 0x358   : > { %v1564_v24 = vpop.permute.xlu1 %1563 }
 0x359   : > { %v1569_v26 = vadd.f32 %v1564_v24, %v1549_v22  ;;  %v2539_v24 = vld [vmem:[%s3194_s8 + $0x24] ss:$8 sps:$4 sm:$0xff]  }
 0x35b   : > { %v1581_v28 = vadd.f32 %v1579_v25, %v1569_v26  ;;  %v1598_v29 = vpop.permute.xlu0 %1597  ;;  %v2537_v26 = vld [vmem:[%s3194_s8 + $0x20] ss:$8 sps:$4 sm:$0xff]  }
 0x35c   : > { %v1566_v30 = vpop.permute.xlu1 %1565 }
 0x35d   : > { %v1570_v32 = vadd.f32 %v1566_v30, %v1550_v27  ;;  %v2542_v27 = vld [vmem:[%s3194_s8 + $0x34] ss:$8 sps:$4 sm:$0xff]  }
 0x35f   : > { %v1582_v33 = vadd.f32 %v1580_v31, %v1570_v32  ;;  %v1630_v39 = vpop.permute.xlu0 %1629 }
 0x360   : > { %v1596_v34 = vpop.permute.xlu1 %1595 }
 0x361   : > { %v1602_v37 = vadd.f32 %v1598_v29, %v1582_v33  ;;  %v1601_v38 = vadd.f32 %v1596_v34, %v1581_v28  ;;  %v2540_v28 = vld [vmem:[%s3194_s8 + $0x30] ss:$8 sps:$4 sm:$0xff]   ;;  %v2543_v33 = vld [vmem:[%s3194_s8] ss:$8 sps:$4 sm:$0xff]  }
 0x363   : > { %v1614_v40 = vadd.f32 %v1612_v36, %v1602_v37  ;;  %v1613_v41 = vadd.f32 %v1611_v35, %v1601_v38  ;;  %v1662_v55 = vpop.permute.xlu0 %1661  ;;  %v2548_v37 = vld [vmem:[%s3194_s8 + $0x14] ss:$8 sps:$4 sm:$0xff]  }
 0x364   : > { %v1628_v42 = vpop.permute.xlu1 %1627 }
 0x365   : > { %v1634_v45 = vadd.f32 %v1630_v39, %v1614_v40  ;;  %v1633_v50 = vadd.f32 %v1628_v42, %v1613_v41  ;;  %v2546_v40 = vld [vmem:[%s3194_s8 + $0x10] ss:$8 sps:$4 sm:$0xff]   ;;  %v2551_v41 = vld [vmem:[%s3194_s8 + $0x44] ss:$8 sps:$4 sm:$0xff]   ;;  %v2549_v42 = vld [vmem:[%s3194_s8 + $0x40] ss:$8 sps:$4 sm:$0xff]  }
 0x367   : > { %v1646_v52 = vadd.f32 %v1644_v44, %v1634_v45  ;;  %v1645_v53 = vadd.f32 %v1643_v43, %v1633_v50  ;;  %v2554_v43 = vld [vmem:[%s3194_s8 + $0x54] ss:$8 sps:$4 sm:$0xff]   ;;  %v2552_v44 = vld [vmem:[%s3194_s8 + $0x50] ss:$8 sps:$4 sm:$0xff]  }
 0x368   : > { %v1660_v59 = vpop.permute.xlu1 %1659 }
 0x369   : > { %v1666_v0 = vadd.f32 %v1662_v55, %v1646_v52  ;;  %v1665_v60 = vadd.f32 %v1660_v59, %v1645_v53 }
 0x36b   : > { %v1670_v61 = vadd.f32 %v1668_v51, %v1666_v0  ;;  %v1669_v54 = vadd.f32 %v1667_v58, %v1665_v60 }
 0x36d   : > { %v2287_v63 = vmul.f32 -1.442695, %v1670_v61  ;;  %v2286_v62 = vmul.f32 -1.442695, %v1669_v54 }
 0x36f   : > { %2555 = vpow2.f32 %v2287_v63 }
 0x370   : > { %2557 = vpow2.f32 %v2286_v62 }
 0x379   : > { %v2556_v1 = vpop.eup %2555 }
 0x37a   : > { %v2558_v4 = vpop.eup %2557  ;;  %v1678_v7 = vadd.f32 1.0, %v2556_v1 }
 0x37b   : > { %v1677_v8 = vadd.f32 1.0, %v2558_v4 }
 0x37c   : > { %2559 = vrcp.f32 %v1678_v7 }
 0x37d   : > { %2561 = vrcp.f32 %v1677_v8 }
 0x386   : > { %v3034_v10 = vpop.eup %2559 }
 0x387   : > { %v3036_v11 = vpop.eup %2561  ;;  %v1684_v13 = vmul.f32 %v3034_v10, %v2842_v57 }
 0x388   : > { %v1683_v22 = vmul.f32 %v3036_v11, %v2840_v56 }
 0x38a   : > { %v1685_v25 = vpack.c.bf16 %v1684_v13, %v1683_v22 }
 0x38c   : > { %2356 = vmatpush3.bf16.msra.mxu1 %v1685_v25  ;;  %2362 = vmatpush3.bf16.msra.mxu0 %v1685_v25 }
 0x38d   : > { %1802 = vmatprep.subr.bf16.mxu0 %v2539_v24 }
 0x38f   : > { %2358 = vmatmul.mubr.msk.bf16.vlgmr.msra.gmra.mrb[24].mxu1 %vm373_vm1, %v2761_v3  ;;  %2364 = vmatmul.mubr.msk.bf16.vlgmr.msra.gmra.mrb[8].mxu0 %vm373_vm1, %v2775_v5  ;;  %v2545_v3 = vld [vmem:[%s3194_s8 + $0x4] ss:$8 sps:$4 sm:$0xff]  }
 0x390   : > { %1803 = vmatpush1.bf16.msra.mxu0 %v2537_v26  ;;  %1834 = vmatprep.mubr.bf16.mxu0 %v2634_v20 }
 0x391   : > { %1804 = vmatprep.subr.bf16.mxu0 %v2542_v27 }
 0x394   : > { %1805 = vmatpush1.bf16.msra.mxu0 %v2540_v28  ;;  %v2068_v28 = vld [vmem:[%s3190_s4] sm:$0xff] }
 0x395   : > { %1868 = vmatprep.subr.bf16.mxu0 %v2545_v3 }
 0x462   : > { %v1720_v29 = vpop.f32.mrb[24].mxu1  ;;  %v1762_v5 = vpop.f32.mrb[8].mxu0 }
 0x463   : > { %v2359_v30 = vpop.f32.mrb[25].mxu1  ;;  %v2365_v31 = vpop.f32.mrb[9].mxu0 }
 0x464   : > { %v1723_v32 = vpop.f32.mrb[26].mxu1  ;;  %v1765_v34 = vpop.f32.mrb[10].mxu0 }
 0x465   : > { %v1727_v35 = vpack.c.bf16 %v1723_v32, %v1720_v29  ;;  %v2360_v36 = vpop.f32.mrb[27].mxu1  ;;  %v1769_v38 = vpack.c.bf16 %v1765_v34, %v1762_v5  ;;  %v2366_v39 = vpop.f32.mrb[11].mxu0 }
 0x467   : > { %2298 = vmatmul.mubr.msk.bf16.vlgmr.msra.gmra.mrb[0].mxu0 %vm1166_vm4, %v1727_v35 }
 0x468   : > { %1869 = vmatpush1.bf16.msra.mxu0 %v2543_v33  ;;  %1900 = vmatprep.mubr.bf16.mxu0 %v2634_v20 }
 0x469   : > { %1870 = vmatprep.subr.bf16.mxu0 %v2548_v37  ;;  %v2084_v37 = vsub.f32 1.0, %v3036_v11 }
 0x46c   : > { %1871 = vmatpush1.bf16.msra.mxu0 %v2546_v40 }
 0x46d   : > { %1939 = vmatprep.subr.bf16.mxu0 %v2551_v41  ;;  %v2085_v41 = vsub.f32 1.0, %v3034_v10 }
 0x473   : > { %2303 = vmatmul.mubr.msk.bf16.vlgmr.msra.gmra.mrb[0].mxu0 %vm1166_vm4, %v1685_v25 }
 0x474   : > { %1940 = vmatpush1.bf16.msra.mxu0 %v2549_v42  ;;  %1971 = vmatprep.mubr.bf16.mxu0 %v2634_v20 }
 0x475   : > { %1941 = vmatprep.subr.bf16.mxu0 %v2554_v43 }
 0x478   : > { %1942 = vmatpush1.bf16.msra.mxu0 %v2552_v44 }
 0x47f   : > { %2312 = vmatmul.mubr.msk.bf16.vlgmr.msra.gmra.mrb[0].mxu0 %vm1166_vm4, %v1769_v38 }
 0x552   : > { %v1973_v45 = vpop.f32.mrb[0].mxu0 }
 0x553   : > { %v1975_v50 = vpop.f32.mrb[1].mxu0  ;;  %v1992_v52 = vmul.f32 %v1973_v45, %v2970_v47  ;;  %v2004_v58 = vmul.f32 %v1973_v45, %v3010_v17  ;;  %v2016_v59 = vmul.f32 %v1973_v45, %v2968_v46 }
 0x554   : > { %v1977_v53 = vpop.f32.mrb[2].mxu0  ;;  %v2056_v46 = vmul.f32 %v1975_v50, %v3000_v12  ;;  %v2028_v4 = vmul.f32 %v1975_v50, %v3012_v18 }
 0x555   : > { %1996 = vrot.lane.b32.xlu1 %v1992_v52, %s2643_s24  ;;  %v1979_v51 = vpop.f32.mrb[3].mxu0  ;;  %v1993_v55 = vmul.f32 %v1977_v53, %v2974_v49  ;;  %v2005_v20 = vmul.f32 %v1977_v53, %v3008_v16  ;;  %v2017_v47 = vmul.f32 %v1977_v53, %v2972_v48  ;;  %v2032_v49 = vmul.f32 %v1975_v50, %v2983_v2 }
 0x556   : > { %v2033_v0 = vmul.f32 %v1979_v51, %v2987_v6  ;;  %v2044_v16 = vmul.f32 %v1975_v50, %v3019_v23  ;;  %v2045_v17 = vmul.f32 %v1979_v51, %v3016_v21  ;;  %v2057_v48 = vmul.f32 %v1979_v51, %v2993_v9 }
 0x557   : > { %1998 = vrot.lane.b32.xlu0 %v1993_v55, %s2643_s24  ;;  %v1990_v21 = vmul.f32 %v1973_v45, %v3004_v14  ;;  %v1991_v12 = vmul.f32 %v1977_v53, %v3006_v15  ;;  %v2029_v7 = vmul.f32 %v1979_v51, %v3014_v19  ;;  %v2069_v19 = vld [vmem:[%s3190_s4 + $0x8] sm:$0xff] }
 0x559   : > { %2008 = vrot.lane.b32.xlu1 %v2004_v58, %s2642_s27 }
 0x55b   : > { %2010 = vrot.lane.b32.xlu0 %v2005_v20, %s2642_s27 }
 0x55d   : > { %2020 = vrot.lane.b32.xlu1 %v2016_v59, %s2644_s21 }
 0x55f   : > { %2022 = vrot.lane.b32.xlu0 %v2017_v47, %s2644_s21 }
 0x561   : > { %2036 = vrot.lane.b32.xlu1 %v2032_v49, %s2643_s24 }
 0x563   : > { %2038 = vrot.lane.b32.xlu0 %v2033_v0, %s2643_s24 }
 0x565   : > { %2048 = vrot.lane.b32.xlu1 %v2044_v16, %s2642_s27 }
 0x567   : > { %2050 = vrot.lane.b32.xlu0 %v2045_v17, %s2642_s27  ;;  %s3141_s27 = scalar_lea.hbm %s3195_s9, %s2318_s17 }
 0x569   : > { %2060 = vrot.lane.b32.xlu1 %v2056_v46, %s2644_s21 }
 0x56b   : > { %2062 = vrot.lane.b32.xlu0 %v2057_v48, %s2644_s21 }
 0x56d   : > { %2076 = vrot.lane.b32.xlu1 %v2840_v56, %s2644_s21 }
 0x56f   : > { %2078 = vrot.lane.b32.xlu0 %v2842_v57, %s2644_s21 }
 0x5c7   : > { %v1997_v2 = vpop.permute.xlu1 %1996 }
 0x5c8   : > { %v2002_v60 = vadd.f32 %v1997_v2, %v1990_v21 }
 0x5c9   : > { %v1999_v6 = vpop.permute.xlu0 %1998 }
 0x5ca   : > { %v2003_v9 = vadd.f32 %v1999_v6, %v1991_v12 }
 0x5cb   : > { %v2009_v23 = vpop.permute.xlu1 %2008 }
 0x5cc   : > { %v2014_v54 = vadd.f32 %v2009_v23, %v2002_v60 }
 0x5cd   : > { %v2011_v61 = vpop.permute.xlu0 %2010 }
 0x5ce   : > { %v2015_v62 = vadd.f32 %v2011_v61, %v2003_v9 }
 0x5cf   : > { %v2021_v63 = vpop.permute.xlu1 %2020 }
 0x5d0   : > { %v2026_v1 = vadd.f32 %v2021_v63, %v2014_v54 }
 0x5d1   : > { %v2023_v56 = vpop.permute.xlu0 %2022 }
 0x5d2   : > { %v2027_v57 = vadd.f32 %v2023_v56, %v2015_v62  ;;  %v2030_v8 = vadd.f32 %v2028_v4, %v2026_v1 }
 0x5d3   : > { %v2037_v13 = vpop.permute.xlu1 %2036 }
 0x5d4   : > { %v2031_v22 = vadd.f32 %v2029_v7, %v2027_v57  ;;  %v2042_v25 = vadd.f32 %v2037_v13, %v2030_v8 }
 0x5d5   : > { %v2039_v14 = vpop.permute.xlu0 %2038 }
 0x5d6   : > { %v2043_v15 = vadd.f32 %v2039_v14, %v2031_v22 }
 0x5d7   : > { %v2049_v24 = vpop.permute.xlu1 %2048 }
 0x5d8   : > { %v2054_v27 = vadd.f32 %v2049_v24, %v2042_v25 }
 0x5d9   : > { %v2051_v26 = vpop.permute.xlu0 %2050 }
 0x5da   : > { %v2055_v29 = vadd.f32 %v2051_v26, %v2043_v15 }
 0x5db   : > { %v2061_v3 = vpop.permute.xlu1 %2060 }
 0x5dc   : > { %v2066_v18 = vadd.f32 %v2061_v3, %v2054_v27 }
 0x5dd   : > { %v2063_v5 = vpop.permute.xlu0 %2062 }
 0x5de   : > { %v2070_v30 = vadd.f32 %v2068_v28, %v2066_v18  ;;  %v2067_v31 = vadd.f32 %v2063_v5, %v2055_v29 }
 0x5df   : > { %v2077_v35 = vpop.permute.xlu1 %2076 }
 0x5e0   : > { %2563 = vtanh.f32 %v2070_v30  ;;  %v2071_v32 = vadd.f32 %v2069_v19, %v2067_v31  ;;  %v2082_v39 = vmul.f32 %v3036_v11, %v2077_v35 }
 0x5e1   : > { %v2079_v36 = vpop.permute.xlu0 %2078 }
 0x5e2   : > { %2565 = vtanh.f32 %v2071_v32  ;;  %v2083_v43 = vmul.f32 %v3034_v10, %v2079_v36 }
 0x5ea   : > { %v2564_v33 = vpop.eup %2563 }
 0x5eb   : > { %2088 = vrot.lane.b32.xlu1 %v2564_v33, %s2644_s21 }
 0x5ec   : > { %v2566_v34 = vpop.eup %2565 }
 0x5ed   : > { %2090 = vrot.lane.b32.xlu0 %v2566_v34, %s2644_s21 }
 0x65d   : > { %v2089_v38 = vpop.permute.xlu1 %2088 }
 0x65e   : > { %v2094_v40 = vmul.f32 %v2089_v38, %v2084_v37 }
 0x65f   : > { %v2091_v42 = vpop.permute.xlu0 %2090 }
 0x660   : > { %v2096_v44 = vadd.f32 %v2094_v40, %v2082_v39  ;;  %v2095_v45 = vmul.f32 %v2091_v42, %v2085_v41 }
 0x662   : > { %v2097_v50 = vadd.f32 %v2095_v45, %v2083_v43  ;;  %2100 = vrot.lane.b32.xlu1 %v2096_v44, %s2643_s24 }
 0x664   : > { %2102 = vrot.lane.b32.xlu0 %v2097_v50, %s2643_s24  ;;  %s3145_s24 = scalar_lea.sflag [#allocation3], %s340_s28 }
 0x6d4   : > { %v2101_v11 = vpop.permute.xlu1 %2100 }
 0x6d5   : > { %2106 = vst.msk [vmem:[%s342_s14] sm:$0xff] %vm1166_vm4, %v2101_v11 }
 0x6d6   : > { %v2103_v10 = vpop.permute.xlu0 %2102 }
 0x6d7   : > { %2107 = vst.msk [vmem:[%s342_s14 + $0x8] sm:$0xff] %vm1166_vm4, %v2103_v10 }
 0x6d8   : > { %2580 = shalt.err (!%p2577_p3)
}
 0x6d9   : > { %s2581_s28 = scalar_lea.hbm %s3141_s27, 256  ;;  %s2585_s17 = scalar_lea.hbm %s3195_s9, 512 }
 0x6da   : > { %p2582_p4 = scmp.ne.s32.totalorder %s3141_s27, %s2581_s28  ;;  %p2586_p9 = scmp.lt.u32.totalorder %s3141_s27, %s3195_s9 }
 0x6db   : > { %p2587_p10 = scmp.lt.u32.totalorder %s2585_s17, %s2581_s28  ;;  %p2589_p12 = scmp.lt.u32.totalorder %s2581_s28, %s3141_s27 }
 0x6dc   : > { %p2583_p7 = pnand %p2582_p4, %p2736_p5 }
 0x6dd   : > { %p2588_p11 = por %p2587_p10, %p2586_p9 }
 0x6de   : > { %p2584_p8 = pneg %p2583_p7 }
 0x6df   : > { %p2590_p13 = por %p2589_p12, %p2588_p11 }
 0x6e1   : > { %p2591_p0 = pnand %p2590_p13, %p2584_p8 }
 0x6e3   : > { %2594 = shalt.err (!%p2591_p0)
}
 0x6e4   : > { %s2646_s22 = smov 128   ;;  %s2647_s13 = smov 8  }
 0x6e5   : > { %2427 = dma.vmem_to_hbm [thread:$0]  (%p2736_p5), %s3136_s16, 256, %s3141_s27, %s3145_s24, %s2646_s22, %s2646_s22, %s2647_s13  }
 0x6e6 PF: > { %p2433_p1 = scmp.ge.s32.totalorder %s2629_s12, 2  ;;  %s2137_s25 = sand.u32 1, %s2617_s30  }
 0x6e7   : > { %s2138_s26 = scalar_lea.sflag [#allocation3], %s2137_s25 }
 0x6e8   : > { %p2430_p2 = pnand %p2433_p1, %p2740_p6 }
 0x6ea   : > { %2612 = dma.done.wait (!%p2430_p2), %s2138_s26, 256  }
 0x6eb   : > { %2614 = vsyncadd (!%p2430_p2), %s2138_s26, 4294967040  ;;  %p19_p3 = scmp.ge.s32.totalorder %s2723_s15, 4   ;;  %s3198_s30 = smov %s2621_s10 }
 0x6ec   : > { %s3199_s10 = smov %s2625_s11  ;;  %s3200_s11 = smov %s2734_s18 }
 0x6ed   : > { %s3201_s12 = smov %s2723_s15  ;;  %21 = sbr.rel (!%p19_p3) target bundleno = 3 (0x3), region = 102 }
 0x6f4   :  { %2143 = vsyncpa [#allocation3], 1 }
 0x6f5   :  { %2145 = vsyncpa [#allocation3 + $0x1], 1 }

</bundles_post_ra>
